<compile_context>
chip_gen: v6e
topology: v6e:2x2x1
jax: 0.10.0
libtpu: 0.0.40
codegen_flags: <defaults>
</compile_context>

<pallas_src>
import math

import jax
import jax.numpy as jnp
from jax.experimental import pallas as pl
from jax.experimental.pallas import tpu as pltpu


# ---------------------------------------------------------------------------
# Kernels
# ---------------------------------------------------------------------------
def _matmul_kernel(x_ref, w_ref, o_ref, acc_ref):
    # x_ref: (tm, tk), w_ref: (tk, tn) -> o_ref: (tm, tn); K is the last grid axis.
    k = pl.program_id(2)

    @pl.when(k == 0)
    def _():
        acc_ref[...] = jnp.zeros_like(acc_ref)

    acc_ref[...] += jnp.dot(x_ref[...], w_ref[...], preferred_element_type=jnp.float32)

    @pl.when(k == pl.num_programs(2) - 1)
    def _():
        o_ref[...] = acc_ref[...].astype(o_ref.dtype)


def _matmul_bias_kernel(x_ref, w_ref, b_ref, o_ref, acc_ref):
    k = pl.program_id(2)

    @pl.when(k == 0)
    def _():
        acc_ref[...] = jnp.zeros_like(acc_ref)

    acc_ref[...] += jnp.dot(x_ref[...], w_ref[...], preferred_element_type=jnp.float32)

    @pl.when(k == pl.num_programs(2) - 1)
    def _():
        # Bias added exactly once, at finalize (K is a reduction grid axis).
        o_ref[...] = (acc_ref[...] + b_ref[...].astype(jnp.float32)).astype(o_ref.dtype)


def _small_matmul_kernel(x_ref, w_ref, o_ref):
    # Resident-weight fast path: whole (K, N) weight in VMEM, stream only M.
    o_ref[...] = jnp.dot(
        x_ref[...], w_ref[...], preferred_element_type=jnp.float32
    ).astype(o_ref.dtype)


def _small_matmul_bias_kernel(x_ref, w_ref, b_ref, o_ref):
    acc = jnp.dot(x_ref[...], w_ref[...], preferred_element_type=jnp.float32)
    o_ref[...] = (acc + b_ref[...].astype(jnp.float32)).astype(o_ref.dtype)


# ---------------------------------------------------------------------------
# Tiling / budgeting helpers
# ---------------------------------------------------------------------------
_MN_TILE_CANDS = (1024, 512, 256, 128)
_M_TILE_CANDS = (1024, 512, 256, 128, 64, 32, 16, 8)


def _round_up(x, m):
    return ((x + m - 1) // m) * m


def _pick_tile(dim, target, unit, cands):
    """Largest candidate tile <= target whose padding waste vs. the unit-aligned size is <=10%."""
    base = _round_up(dim, unit)
    allowed = base + max(base // 10, 0)
    for cand in cands:
        if cand > target:
            continue
        if _round_up(dim, cand) <= allowed:
            return cand
    return unit


def _physical_vmem_bytes():
    try:
        return int(pltpu.get_tpu_info().vmem_capacity_bytes)
    except Exception:
        return 64 << 20  # conservative default (v7x per-core VMEM)


# ---------------------------------------------------------------------------
# Builder: hoists weight/bias padding + transpose out of the per-call path.
# ---------------------------------------------------------------------------
def make_linear_norm(weight, bias=None, *, tm_target=512, tn_target=512,
                     tk_target=1024, mxu_dtype=None, force_general=False):
    """Returns apply(x) computing x @ weight.T (+ bias), matching torch.nn.Linear.

    weight: (out_features, in_features). One-time pad + transpose to (K, N) happens here.
    mxu_dtype: optionally cast operands (e.g. jnp.bfloat16) for the MXU; f32 accumulation kept.
    """
    out_f, in_f = weight.shape
    w_dtype = jnp.dtype(mxu_dtype) if mxu_dtype is not None else jnp.dtype(weight.dtype)
    w_item = w_dtype.itemsize
    x_item = 4  # budget with f32 activations (worst case)
    out_item = 4
    b_item = 4

    phys = _physical_vmem_bytes()
    vmem_cap = min(int(phys * 0.85), 100 << 20)  # scoped-vmem limit for the kernel
    tile_budget = int(vmem_cap * 0.7)            # headroom for compiler scratch / pipelining

    kp128 = _round_up(in_f, 128)
    np128 = _round_up(out_f, 128)
    resident_bytes = kp128 * np128 * w_item
    use_resident = (not force_general) and resident_bytes <= min(8 << 20, tile_budget // 3)

    if use_resident:
        kp, npad = kp128, np128
        tn = tk = None
        tm_cap = tm_target

        def _est_resident(tm):
            return (2 * tm * kp * x_item + 2 * kp * npad * w_item
                    + 2 * tm * npad * out_item + 2 * npad * b_item)

        while _est_resident(tm_cap) > tile_budget and tm_cap > 8:
            tm_cap //= 2
    else:
        tn = _pick_tile(out_f, tn_target, 128, _MN_TILE_CANDS)
        tk = _pick_tile(in_f, tk_target, 128, _MN_TILE_CANDS)
        tm_cap = tm_target

        def _est_general(tm, tn_, tk_):
            return (2 * tm * tk_ * x_item + 2 * tk_ * tn_ * w_item
                    + 2 * tm * tn_ * out_item + tm * tn_ * 4 + 2 * tn_ * b_item)

        while _est_general(tm_cap, tn, tk) > tile_budget:
            if tk > 128:
                tk //= 2
            elif tn > 128:
                tn //= 2
            elif tm_cap > 8:
                tm_cap //= 2
            else:
                break
        kp = _round_up(in_f, tk)
        npad = _round_up(out_f, tn)

    # One-time weight pad + transpose to (K, N): canonical contraction on the MXU,
    # no per-tile relayout and no per-call weight-pad HBM pass.
    w_kn = jnp.pad(weight, ((0, npad - out_f), (0, kp - in_f))).T.astype(w_dtype)

    if bias is not None:
        b_pad = jnp.pad(bias, ((0, npad - out_f),)).reshape(1, npad).astype(jnp.float32)
    else:
        b_pad = None

    def apply(x):
        *lead, xin = x.shape
        assert xin == in_f, "in_features mismatch"
        out_dtype = x.dtype
        x2 = x.reshape(-1, in_f)
        if mxu_dtype is not None:
            x2 = x2.astype(w_dtype)
        m = x2.shape[0]

        tm = _pick_tile(m, tm_cap, 8, _M_TILE_CANDS)
        mp = _round_up(m, tm)
        xp = x2 if (mp == m and kp == in_f) else jnp.pad(x2, ((0, mp - m), (0, kp - in_f)))
        xi = jnp.dtype(xp.dtype).itemsize
        oi = jnp.dtype(out_dtype).itemsize
        out_shape = jax.ShapeDtypeStruct((mp, npad), out_dtype)

        if use_resident:
            grid = (mp // tm,)
            cost = pl.CostEstimate(
                flops=2 * mp * npad * kp, transcendentals=0,
                bytes_accessed=(mp * kp * xi + kp * npad * w_item + mp * npad * oi
                                + (npad * b_item if b_pad is not None else 0)))
            params = pltpu.CompilerParams(dimension_semantics=("parallel",),
                                          vmem_limit_bytes=vmem_cap)
            x_spec = pl.BlockSpec((tm, kp), lambda i: (i, 0))
            w_spec = pl.BlockSpec((kp, npad), lambda i: (0, 0))   # resident: never re-fetched
            o_spec = pl.BlockSpec((tm, npad), lambda i: (i, 0))
            if b_pad is None:
                out = pl.pallas_call(
                    _small_matmul_kernel, out_shape=out_shape,
                    grid_spec=pltpu.PrefetchScalarGridSpec(
                        num_scalar_prefetch=0, grid=grid,
                        in_specs=[x_spec, w_spec], out_specs=o_spec),
                    compiler_params=params, cost_estimate=cost,
                )(xp, w_kn)
            else:
                b_spec = pl.BlockSpec((1, npad), lambda i: (0, 0))
                out = pl.pallas_call(
                    _small_matmul_bias_kernel, out_shape=out_shape,
                    grid_spec=pltpu.PrefetchScalarGridSpec(
                        num_scalar_prefetch=0, grid=grid,
                        in_specs=[x_spec, w_spec, b_spec], out_specs=o_spec),
                    compiler_params=params, cost_estimate=cost,
                )(xp, w_kn, b_pad)
        else:
            # Keep both v7x TensorCores busy: if M and N would both be single blocks,
            # split N (128 always divides the padded N).
            tn_call = tn
            if (mp // tm) == 1 and (npad // tn_call) == 1 and npad >= 256:
                tn_call = 128
            grid_m, grid_n, grid_k = mp // tm, npad // tn_call, kp // tk
            grid = (grid_m, grid_n, grid_k)
            cost = pl.CostEstimate(
                flops=2 * mp * npad * kp, transcendentals=0,
                bytes_accessed=(mp * kp * xi * grid_n + kp * npad * w_item * grid_m
                                + mp * npad * oi
                                + (npad * b_item * grid_m if b_pad is not None else 0)))
            params = pltpu.CompilerParams(
                dimension_semantics=("parallel", "parallel", "arbitrary"),
                vmem_limit_bytes=vmem_cap)
            x_spec = pl.BlockSpec((tm, tk), lambda i, j, k: (i, k))
            w_spec = pl.BlockSpec((tk, tn_call), lambda i, j, k: (k, j))
            o_spec = pl.BlockSpec((tm, tn_call), lambda i, j, k: (i, j))
            scratch = [pltpu.VMEM((tm, tn_call), jnp.float32)]
            if b_pad is None:
                out = pl.pallas_call(
                    _matmul_kernel, out_shape=out_shape,
                    grid_spec=pltpu.PrefetchScalarGridSpec(
                        num_scalar_prefetch=0, grid=grid,
                        in_specs=[x_spec, w_spec], out_specs=o_spec,
                        scratch_shapes=scratch),
                    compiler_params=params, cost_estimate=cost,
                )(xp, w_kn)
            else:
                b_spec = pl.BlockSpec((1, tn_call), lambda i, j, k: (0, j))
                out = pl.pallas_call(
                    _matmul_bias_kernel, out_shape=out_shape,
                    grid_spec=pltpu.PrefetchScalarGridSpec(
                        num_scalar_prefetch=0, grid=grid,
                        in_specs=[x_spec, w_spec, b_spec], out_specs=o_spec,
                        scratch_shapes=scratch),
                    compiler_params=params, cost_estimate=cost,
                )(xp, w_kn, b_pad)

        out = out[:m, :out_f]
        return out.reshape(*lead, out_f)

    return apply


def linear_norm(x, weight, bias=None, **kwargs):
    """Convenience one-shot wrapper: y = x @ weight.T (+ bias)."""
    return make_linear_norm(weight, bias, **kwargs)(x)


def init_linear_norm_params(key, in_features, out_features, bias=False, dtype=jnp.float32):
    """xavier_uniform weight init (matches nn.init.xavier_uniform_), zero bias."""
    bound = math.sqrt(6.0 / (in_features + out_features))
    w = jax.random.uniform(
        key, (out_features, in_features), dtype=dtype, minval=-bound, maxval=bound)
    b = jnp.zeros((out_features,), dtype=dtype) if bias else None
    return w, b


if __name__ == "__main__":
    key = jax.random.PRNGKey(0)
    k_x, k_w, k_b, k_x2, k_w2 = jax.random.split(key, 5)

    batch, seq, in_features, out_features = 2, 8, 32, 64
    x = jax.random.normal(k_x, (batch, seq, in_features), dtype=jnp.float32)
    weight, _ = init_linear_norm_params(k_w, in_features, out_features, bias=False)
    bias_nz = jax.random.normal(k_b, (out_features,), dtype=jnp.float32)
    y_ref = jnp.einsum("bsk,nk->bsn", x, weight)

    # --- resident-weight fast path, no bias (LinearNorm default bias=False) ---
    y = make_linear_norm(weight)(x)
    jax.block_until_ready(y)
    assert y.shape == (batch, seq, out_features)
    assert jnp.allclose(y, y_ref, atol=1e-5, rtol=1e-5)

    # --- resident-weight fast path, with bias ---
    yb = make_linear_norm(weight, bias_nz)(x)
    jax.block_until_ready(yb)
    assert jnp.allclose(yb, y_ref + bias_nz[None, None, :], atol=1e-5, rtol=1e-5)

    # --- general tiled path with a multi-step K reduction (forced, small shapes) ---
    in2 = 256
    x2 = jax.random.normal(k_x2, (batch, seq, in2), dtype=jnp.float32)
    weight2, _ = init_linear_norm_params(k_w2, in2, out_features, bias=False)
    y2_ref = jnp.einsum("bsk,nk->bsn", x2, weight2)

    y2 = make_linear_norm(weight2, force_general=True, tk_target=128)(x2)
    jax.block_until_ready(y2)
    assert jnp.allclose(y2, y2_ref, atol=1e-4, rtol=1e-5)

    y2b = make_linear_norm(weight2, bias_nz, force_general=True, tk_target=128)(x2)
    jax.block_until_ready(y2b)
    assert jnp.allclose(y2b, y2_ref + bias_nz[None, None, :], atol=1e-4, rtol=1e-5)

    print("KERNEL_OK")
</pallas_src>

<mosaic_0001>
module attributes {stable_mosaic.version = 11 : i64} {
  func.func @_small_matmul_kernel(%arg0: i32, %arg1: memref<16x128xf32, #tpu.memory_space<vmem>>, %arg2: memref<128x128xf32, #tpu.memory_space<vmem>>, %arg3: memref<16x128xf32, #tpu.memory_space<vmem>>) attributes {dimension_semantics = [#tpu.dimension_semantics<parallel>], iteration_bounds = array<i64: 1>, scalar_prefetch = 0 : i64, scratch_operands = 0 : i64, tpu.core_type = #tpu.core_type<tc>, window_params = [{transform_indices = @transform_0, window_bounds = array<i64: 16, 128>}, {pipeline_mode = #tpu.pipeline_mode<synchronous>, transform_indices = @transform_1, window_bounds = array<i64: 128, 128>}, {transform_indices = @transform_2, window_bounds = array<i64: 16, 128>}]} {
    %c0 = arith.constant 0 : index
    %c0_0 = arith.constant 0 : index
    %0 = vector.load %arg1[%c0, %c0_0] : memref<16x128xf32, #tpu.memory_space<vmem>>, vector<16x128xf32>
    %c0_1 = arith.constant 0 : index
    %c0_2 = arith.constant 0 : index
    %1 = vector.load %arg2[%c0_1, %c0_2] : memref<128x128xf32, #tpu.memory_space<vmem>>, vector<128x128xf32>
    %cst = arith.constant dense<0.000000e+00> : vector<16x128xf32>
    %2 = tpu.matmul %0, %1, %cst {dimension_numbers = #tpu.dot_dimension_numbers<[1], [0], [0], [1], [0, 0, 1, 1], [], []>} : vector<16x128xf32>, vector<128x128xf32>, vector<16x128xf32> -> vector<16x128xf32>
    %c0_3 = arith.constant 0 : index
    %c0_4 = arith.constant 0 : index
    %3 = vector.load %arg3[%c0_3, %c0_4] : memref<16x128xf32, #tpu.memory_space<vmem>>, vector<16x128xf32>
    tpu.vector_store %arg3[%c0_3, %c0_4], %2 {strides = array<i32>} : memref<16x128xf32, #tpu.memory_space<vmem>>, vector<16x128xf32>,
    return
  }
  func.func @transform_0(%arg0: i32) -> (i32, i32) {
    %c0_i32 = arith.constant 0 : i32
    %c0_i32_0 = arith.constant 0 : i32
    return %arg0, %c0_i32 : i32, i32
  }
  func.func @transform_1(%arg0: i32) -> (i32, i32) {
    %c0_i32 = arith.constant 0 : i32
    %c0_i32_0 = arith.constant 0 : i32
    %c0_i32_1 = arith.constant 0 : i32
    return %c0_i32, %c0_i32_0 : i32, i32
  }
  func.func @transform_2(%arg0: i32) -> (i32, i32) {
    %c0_i32 = arith.constant 0 : i32
    %c0_i32_0 = arith.constant 0 : i32
    return %arg0, %c0_i32 : i32, i32
  }
}

</mosaic_0001>

<bundles_post_ra>
// kernel: tpu_custom_call.1
= control target key start
LH: loop header
LB: loop body
LE: loop exit
PB: predicated region body
PF: predicated region fallthrough
CT: control target
= control target key end

     0   :  { %7 = vsyncpa [#allocation3], 0  ;;  %s315_s0 = inlined_call_operand.hbm [shape: f32[16,128], index: 0, kind: input, shape index: {}]   ;;  %s316_s1 = inlined_call_operand.hbm [shape: f32[128,128], index: 1, kind: input, shape index: {}]   ;;  %s317_s2 = inlined_call_operand.hbm [shape: f32[16,128], index: 2, kind: output, shape index: {}]  }
   0x1   :  { %8 = vsyncpa [#allocation6], 0 }
   0x2   :  { %9 = vsyncpa [#allocation4], 0  ;;  %s277_s9 = smov [#allocation2]  }
   0x3   :  { %s15_s10 = sshll.u32 %s277_s9, 4  ;;  %s16_s10 = int_to_ptr.vmem [resolvable:$true] %s15_s10 }
   0x4   :  { %s219_s11 = scalar_lea.vmem %s16_s10, 256  ;;  %p224_p1 = scmp.lt.s32.totalorder %s16_s10, %s16_s10 }
   0x5   :  { %p220_p0 = scmp.ne.s32.totalorder %s16_s10, %s219_s11  ;;  %p225_p2 = scmp.lt.s32.totalorder %s219_s11, %s219_s11 }
   0x7   :  { %p226_p3 = por %p225_p2, %p224_p1 }
   0x9   :  { %p227_p4 = pnand %p226_p3, %p220_p0 }
   0xb   :  { %230 = shalt.err (!%p227_p4)
}
   0xc   :  { %s278_s12 = smov 128   ;;  %s279_s13 = smov 8  }
   0xd   :  { %21 = dma.hbm_to_vmem [thread:$0]  %s315_s0, 256, %s16_s10, [#allocation3], %s278_s12, %s278_s12, %s279_s13  }
   0xe   :  { %s280_s16 = smov [#allocation5]  }
   0xf   :  { %s27_s17 = sshll.u32 %s280_s16, 4  ;;  %s28_s17 = int_to_ptr.vmem [resolvable:$true] %s27_s17 }
  0x10   :  { %s239_s18 = scalar_lea.vmem %s28_s17, 2048  ;;  %p244_p6 = scmp.lt.s32.totalorder %s28_s17, %s28_s17 }
  0x11   :  { %p240_p5 = scmp.ne.s32.totalorder %s28_s17, %s239_s18  ;;  %p245_p7 = scmp.lt.s32.totalorder %s239_s18, %s239_s18 }
  0x13   :  { %p246_p8 = por %p245_p7, %p244_p6 }
  0x15   :  { %p247_p9 = pnand %p246_p8, %p240_p5 }
  0x17   :  { %250 = shalt.err (!%p247_p9)
}
  0x18   :  { %33 = dma.hbm_to_vmem [thread:$0]  %s316_s1, 2048, %s28_s17, [#allocation6], %s278_s12, %s278_s12, %s279_s13  }
  0x19   :  { %271 = dma.done.wait [#allocation3], 256  }
  0x1a   :  { %272 = vsyncadd [#allocation3], 4294967040 }
  0x1b   :  { %273 = dma.done.wait [#allocation6], 2048  }
  0x1c   :  { %274 = vsyncadd [#allocation6], 4294965248  ;;  %v57_v0 = vld [vmem:[#allocation5 + $0x78] sm:$0xff]  ;;  %v56_v1 = vld [vmem:[#allocation5 + $0x70] sm:$0xff]  ;;  %s281_s0 = smov [#allocation7]  }
  0x1d   :  { %171 = vmatprep.subr.mxu0 %v57_v0  ;;  %v55_v2 = vld [vmem:[#allocation5 + $0x68] sm:$0xff]  ;;  %v54_v3 = vld [vmem:[#allocation5 + $0x60] sm:$0xff]  ;;  %v40_v4 = vld [vmem:[#allocation2] sm:$0xff]  ;;  %s140_s1 = sshll.u32 %s281_s0, 4  ;;  %s141_s1 = int_to_ptr.vmem [resolvable:$true] %s140_s1 }
  0x1e   :  { %172 = vmatpush3.msra.mxu0 %v57_v0  ;;  %v53_v5 = vld [vmem:[#allocation5 + $0x58] sm:$0xff]  ;;  %203 = vmatprep.mubr.f32.mxu0 %v40_v4  ;;  %v52_v6 = vld [vmem:[#allocation5 + $0x50] sm:$0xff]  ;;  %v51_v7 = vld [vmem:[#allocation5 + $0x48] sm:$0xff]  ;;  %s251_s21 = scalar_lea.vmem %s141_s1, 256  ;;  %p256_p11 = scmp.lt.s32.totalorder %s141_s1, %s141_s1 }
  0x1f   :  { %173 = vmatprep.subr.mxu0 %v56_v1  ;;  %v50_v8 = vld [vmem:[#allocation5 + $0x40] sm:$0xff]  ;;  %v49_v9 = vld [vmem:[#allocation5 + $0x38] sm:$0xff]  ;;  %v48_v10 = vld [vmem:[#allocation5 + $0x30] sm:$0xff]  ;;  %p252_p10 = scmp.ne.s32.totalorder %s141_s1, %s251_s21  ;;  %p257_p12 = scmp.lt.s32.totalorder %s251_s21, %s251_s21 }
  0x20   :  { %174 = vmatpush3.msra.mxu0 %v56_v1  ;;  %v47_v11 = vld [vmem:[#allocation5 + $0x28] sm:$0xff]  ;;  %v46_v12 = vld [vmem:[#allocation5 + $0x20] sm:$0xff]  ;;  %v45_v13 = vld [vmem:[#allocation5 + $0x18] sm:$0xff] }
  0x21   :  { %175 = vmatprep.subr.mxu0 %v55_v2  ;;  %v44_v14 = vld [vmem:[#allocation5 + $0x10] sm:$0xff]  ;;  %v43_v15 = vld [vmem:[#allocation5 + $0x8] sm:$0xff]  ;;  %v42_v16 = vld [vmem:[#allocation5] sm:$0xff]  ;;  %p258_p13 = por %p257_p12, %p256_p11 }
  0x22   :  { %176 = vmatpush3.msra.mxu0 %v55_v2  ;;  %v41_v17 = vld [vmem:[#allocation2 + $0x8] sm:$0xff] }
  0x23   :  { %177 = vmatprep.subr.mxu0 %v54_v3  ;;  %p259_p0 = pnand %p258_p13, %p252_p10 }
  0x24   :  { %178 = vmatpush3.msra.mxu0 %v54_v3 }
  0x25   :  { %179 = vmatprep.subr.mxu0 %v53_v5 }
  0x26   :  { %180 = vmatpush3.msra.mxu0 %v53_v5 }
  0x27   :  { %181 = vmatprep.subr.mxu0 %v52_v6 }
  0x28   :  { %182 = vmatpush3.msra.mxu0 %v52_v6 }
  0x29   :  { %183 = vmatprep.subr.mxu0 %v51_v7 }
  0x2a   :  { %184 = vmatpush3.msra.mxu0 %v51_v7 }
  0x2b   :  { %185 = vmatprep.subr.mxu0 %v50_v8 }
  0x2c   :  { %186 = vmatpush3.msra.mxu0 %v50_v8 }
  0x2d   :  { %187 = vmatprep.subr.mxu0 %v49_v9 }
  0x2e   :  { %188 = vmatpush3.msra.mxu0 %v49_v9 }
  0x2f   :  { %189 = vmatprep.subr.mxu0 %v48_v10 }
  0x30   :  { %190 = vmatpush3.msra.mxu0 %v48_v10 }
  0x31   :  { %191 = vmatprep.subr.mxu0 %v47_v11 }
  0x32   :  { %192 = vmatpush3.msra.mxu0 %v47_v11 }
  0x33   :  { %193 = vmatprep.subr.mxu0 %v46_v12 }
  0x34   :  { %194 = vmatpush3.msra.mxu0 %v46_v12 }
  0x35   :  { %195 = vmatprep.subr.mxu0 %v45_v13 }
  0x36   :  { %196 = vmatpush3.msra.mxu0 %v45_v13 }
  0x37   :  { %197 = vmatprep.subr.mxu0 %v44_v14 }
  0x38   :  { %198 = vmatpush3.msra.mxu0 %v44_v14 }
  0x39   :  { %199 = vmatprep.subr.mxu0 %v43_v15 }
  0x3a   :  { %200 = vmatpush3.msra.mxu0 %v43_v15 }
  0x3b   :  { %201 = vmatprep.subr.mxu0 %v42_v16 }
  0x3c   :  { %202 = vmatpush3.msra.mxu0 %v42_v16 }
  0x3d   :  { %204 = vmatmul.mubr.f32.vlgmr.msra.gmra.mxu0 %v41_v17 }
  0xfd   :  { %v205_v18 = vpop.f32.mrf.mxu0 }
  0xfe   :  { %134 = vst [vmem:[#allocation7 + $0x8] sm:$0xff] %v205_v18 }
  0xff   :  { %v124_v19 = vpop.f32.mrf.mxu0 }
 0x100   :  { %133 = vst [vmem:[#allocation7] sm:$0xff] %v124_v19 }
 0x101   :  { %262 = shalt.err (!%p259_p0)
}
 0x102   :  { %146 = dma.vmem_to_hbm [thread:$0]  %s141_s1, 256, %s317_s2, [#allocation4], %s278_s12, %s278_s12, %s279_s13  }
 0x103   :  { %275 = dma.done.wait [#allocation4], 256  }
 0x104   :  { %276 = vsyncadd [#allocation4], 4294967040 }
 0x105   :  { %150 = vsyncpa [#allocation3], 1 }
 0x106   :  { %151 = vsyncpa [#allocation6], 1 }
 0x107   :  { %152 = vsyncpa [#allocation4], 1 }

</bundles_post_ra>
